<compile_context>
chip_gen: v7x
topology: tpu7x:2x2x1
jax: 0.10.0
libtpu: 0.0.40
codegen_flags: <defaults>
</compile_context>

<pallas_src>
import functools

import jax
import jax.numpy as jnp
from jax.experimental import pallas as pl
from jax.experimental.pallas import tpu as pltpu

_LANE = 128


def _tpu_defaults():
    """(max_tile_bytes, vmem_limit_bytes) tuned per TPU generation."""
    kind = ""
    try:
        kind = jax.devices()[0].device_kind.lower()
    except Exception:  # pragma: no cover - defensive
        pass
    if "v5" in kind or "v6" in kind:
        return 16 << 20, 64 << 20      # 128 MiB VMEM parts: bigger tiles
    return 8 << 20, 48 << 20           # v7x (64 MiB VMEM) / unknown: conservative


def _pick_hw_tile(hw, row_bytes, max_tile_bytes):
    """Spatial tile (in elements): multiple of 128, as close to the byte cap as
    possible; no divisibility requirement on hw (ragged tail is masked)."""
    if hw <= _LANE:
        return hw
    cap_lanes = max(_LANE, ((max_tile_bytes // max(row_bytes, 1)) // _LANE) * _LANE)
    hw_padded = ((hw + _LANE - 1) // _LANE) * _LANE
    return int(min(hw_padded, cap_lanes))


def _cc_stats_kernel(x_ref, stats_ref, acc_s_ref, acc_q_ref, *,
                     hw_total, hw_tile, chunk, c_block, ragged, unroll):
    """Streams one (1, C, hw_tile) spatial tile, accumulating per-lane
    sum / sum-of-squares; finalizes mean/std on the last grid step."""
    k = pl.program_id(1)

    @pl.when(k == 0)
    def _():
        acc_s_ref[...] = jnp.zeros_like(acc_s_ref)
        acc_q_ref[...] = jnp.zeros_like(acc_q_ref)

    channels = x_ref.shape[1]
    n_chunks = hw_tile // chunk
    tile_base = k * hw_tile
    lane_iota = jax.lax.broadcasted_iota(jnp.int32, (1, 1, chunk), 2)

    # Static channel blocking keeps the register-resident carries small
    # (<= ~16 vregs for c_block=64, f32).  One scratch RMW per block per step.
    c0 = 0
    while c0 < channels:
        cs = min(c_block, channels - c0)

        def chunk_body(j, carry, c0=c0, cs=cs):
            ls, lq = carry
            start = pl.multiple_of(j * chunk, chunk)
            c = x_ref[:, c0:c0 + cs, pl.ds(start, chunk)].astype(jnp.float32)
            if ragged:
                pos = tile_base + j * chunk + lane_iota
                c = jnp.where(pos < hw_total, c, 0.0)
            return ls + c, lq + c * c

        init = (jnp.zeros((1, cs, chunk), jnp.float32),
                jnp.zeros((1, cs, chunk), jnp.float32))
        ls, lq = jax.lax.fori_loop(0, n_chunks, chunk_body, init,
                                   unroll=min(unroll, n_chunks))
        acc_s_ref[:, c0:c0 + cs, :] += ls
        acc_q_ref[:, c0:c0 + cs, :] += lq
        c0 += cs

    # Finalize: one-time cross-lane reduce + mean / unbiased std, lane-dense out.
    @pl.when(k == pl.num_programs(1) - 1)
    def _():
        s = jnp.sum(acc_s_ref[...], axis=-1)                      # (1, C)
        q = jnp.sum(acc_q_ref[...], axis=-1)                      # (1, C)
        mean = s * jnp.float32(1.0 / hw_total)
        # TODO(synk): hw_total == 1 -> NaN, matching torch.std(unbiased=True).
        inv_nm1 = (jnp.float32(1.0 / (hw_total - 1)) if hw_total > 1
                   else jnp.float32(jnp.nan))
        var = (q - s * mean) * inv_nm1
        std = jnp.sqrt(jnp.maximum(var, 0.0))
        stats_ref[...] = jnp.concatenate([mean, std], axis=-1).reshape(stats_ref.shape)


def cc_forward(x, params, *, hw_tile=None, c_block=64, unroll=4):
    """x: (B, C, H, W) float32 or bfloat16.  Returns (B, C, 1, 1) float32."""
    B, C, H, W = x.shape
    HW = H * W
    x_flat = x.reshape(B, C, HW)          # native dtype: no HBM-traffic inflation

    max_tile_bytes, vmem_limit = _tpu_defaults()
    row_bytes = C * x.dtype.itemsize

    if hw_tile is None:
        hw_tile = _pick_hw_tile(HW, row_bytes, max_tile_bytes)
    # Normalize any user-provided tile: multiple of 128 (or the full extent).
    if HW <= _LANE:
        hw_tile = HW
    else:
        hw_tile = max(_LANE, ((hw_tile + _LANE - 1) // _LANE) * _LANE)
        hw_tile = min(hw_tile, ((HW + _LANE - 1) // _LANE) * _LANE)

    chunk = _LANE if hw_tile >= _LANE else hw_tile
    n_k = pl.cdiv(HW, hw_tile)
    ragged = (HW % hw_tile) != 0

    kernel = functools.partial(
        _cc_stats_kernel, hw_total=HW, hw_tile=hw_tile, chunk=chunk,
        c_block=c_block, ragged=ragged, unroll=unroll)

    stats = pl.pallas_call(
        kernel,
        out_shape=jax.ShapeDtypeStruct((B, 1, 2 * C), jnp.float32),
        grid=(B, n_k),
        in_specs=[pl.BlockSpec((1, C, hw_tile), lambda b, k: (b, 0, k))],
        out_specs=pl.BlockSpec((1, 1, 2 * C), lambda b, k: (b, 0, 0)),
        scratch_shapes=[
            pltpu.VMEM((1, C, chunk), jnp.float32),   # per-lane partial sum
            pltpu.VMEM((1, C, chunk), jnp.float32),   # per-lane partial sum-of-squares
        ],
        compiler_params=pltpu.CompilerParams(
            dimension_semantics=("parallel", "arbitrary"),
            vmem_limit_bytes=vmem_limit,
        ),
        cost_estimate=pl.CostEstimate(
            flops=3 * B * C * HW,
            transcendentals=B * C,
            bytes_accessed=int(x.dtype.itemsize) * B * C * HW + 4 * B * 2 * C,
        ),
    )(x_flat)

    # Tiny MLP heads batched over all B rows in plain XLA (M=B instead of a
    # serial M=1 MXU tail per batch inside the kernel).
    (w1m, b1m, w2m, b2m, w1s, b1s, w2s, b2s) = params
    stats = stats.reshape(B, 2 * C)
    mean, std = stats[:, :C], stats[:, C:]
    o_mean = jax.nn.sigmoid(
        jax.nn.gelu(mean @ w1m + b1m, approximate=False) @ w2m + b2m)
    o_std = jax.nn.sigmoid(
        jax.nn.gelu(std @ w1s + b1s, approximate=False) @ w2s + b2s)
    out = 0.5 * (o_mean + o_std)
    return out.reshape(B, C, 1, 1)


def init_params(key, channel, reduction=16):
    hidden = channel // reduction
    assert hidden >= 1
    ks = jax.random.split(key, 8)
    scale1 = 1.0 / jnp.sqrt(channel)
    scale2 = 1.0 / jnp.sqrt(hidden)
    # Weights stored as (in, out); biases as (1, out).
    w1m = jax.random.uniform(ks[0], (channel, hidden), jnp.float32, -scale1, scale1)
    b1m = jax.random.uniform(ks[1], (1, hidden), jnp.float32, -scale1, scale1)
    w2m = jax.random.uniform(ks[2], (hidden, channel), jnp.float32, -scale2, scale2)
    b2m = jax.random.uniform(ks[3], (1, channel), jnp.float32, -scale2, scale2)
    w1s = jax.random.uniform(ks[4], (channel, hidden), jnp.float32, -scale1, scale1)
    b1s = jax.random.uniform(ks[5], (1, hidden), jnp.float32, -scale1, scale1)
    w2s = jax.random.uniform(ks[6], (hidden, channel), jnp.float32, -scale2, scale2)
    b2s = jax.random.uniform(ks[7], (1, channel), jnp.float32, -scale2, scale2)
    return (w1m, b1m, w2m, b2m, w1s, b1s, w2s, b2s)


def cc_reference(x, params):
    """Pure-JAX reference mirroring the PyTorch forward."""
    (w1m, b1m, w2m, b2m, w1s, b1s, w2s, b2s) = params
    B, C, H, W = x.shape
    xf = x.astype(jnp.float32).reshape(B, C, -1)
    mean = xf.mean(axis=-1)                         # AdaptiveAvgPool2d(1)
    std = jnp.std(xf, axis=-1, ddof=1)              # torch.std unbiased

    def mlp(v, w1, b1, w2, b2):
        h = jax.nn.gelu(v @ w1 + b1, approximate=False)
        return jax.nn.sigmoid(h @ w2 + b2)

    out = 0.5 * (mlp(mean, w1m, b1m, w2m, b2m) + mlp(std, w1s, b1s, w2s, b2s))
    return out.reshape(B, C, 1, 1)


if __name__ == "__main__":
    key = jax.random.PRNGKey(0)
    k_x, k_p = jax.random.split(key)

    B, C, H, W = 2, 32, 16, 16          # channel=32, reduction=16 -> hidden=2
    x = jax.random.normal(k_x, (B, C, H, W), jnp.float32)
    params = init_params(k_p, C, reduction=16)
    ref = cc_reference(x, params)

    # Multi-step streamed reduction (grid = (B, 2)) and auto-tile (grid = (B, 1)).
    out_tiled = jax.block_until_ready(cc_forward(x, params, hw_tile=128))
    out_auto = jax.block_until_ready(cc_forward(x, params))
    assert out_tiled.shape == (B, C, 1, 1)
    assert jnp.allclose(out_tiled, ref, atol=1e-5, rtol=1e-5), "tiled mismatch"
    assert jnp.allclose(out_auto, ref, atol=1e-5, rtol=1e-5), "auto mismatch"

    # Native-dtype streaming: bf16 input stays bf16 in HBM, f32 accumulation in-kernel.
    x_bf16 = x.astype(jnp.bfloat16)
    ref_bf16 = cc_reference(x_bf16, params)
    out_bf16 = jax.block_until_ready(cc_forward(x_bf16, params))
    assert jnp.allclose(out_bf16, ref_bf16, atol=1e-3, rtol=1e-3), "bf16 mismatch"

    # Ragged spatial extent (H*W = 225): cdiv grid + in-kernel lane mask.
    xr = jax.random.normal(k_x, (B, C, 15, 15), jnp.float32)
    ref_r = cc_reference(xr, params)
    out_r_auto = jax.block_until_ready(cc_forward(xr, params))                 # 1 tile of 256 lanes
    out_r_tiled = jax.block_until_ready(cc_forward(xr, params, hw_tile=128))   # 2 tiles, masked tail
    assert jnp.allclose(out_r_auto, ref_r, atol=1e-5, rtol=1e-5), "ragged auto mismatch"
    assert jnp.allclose(out_r_tiled, ref_r, atol=1e-5, rtol=1e-5), "ragged tiled mismatch"

    # Tiny spatial extent (< 128 lanes).
    xs = jax.random.normal(k_x, (B, C, 10, 10), jnp.float32)
    ref_s = cc_reference(xs, params)
    out_s = jax.block_until_ready(cc_forward(xs, params))
    assert jnp.allclose(out_s, ref_s, atol=1e-5, rtol=1e-5), "small-HW mismatch"

    print("KERNEL_OK")
</pallas_src>

<mosaic_0001>
module attributes {stable_mosaic.version = 11 : i64} {
  func.func @_cc_stats_kernel(%arg0: i32, %arg1: i32, %arg2: memref<1x32x128xf32, #tpu.memory_space<vmem>>, %arg3: memref<1x1x64xf32, #tpu.memory_space<vmem>>, %arg4: memref<1x32x128xf32, #tpu.memory_space<vmem>>, %arg5: memref<1x32x128xf32, #tpu.memory_space<vmem>>) attributes {dimension_semantics = [#tpu.dimension_semantics<parallel>, #tpu.dimension_semantics<arbitrary>], iteration_bounds = array<i64: 2, 2>, scalar_prefetch = 0 : i64, scratch_operands = 2 : i64, tpu.core_type = #tpu.core_type<tc>, window_params = [{transform_indices = @transform_0, window_bounds = array<i64: 1, 32, 128>}, {transform_indices = @transform_1, window_bounds = array<i64: 1, 1, 64>}]} {
    %c0_i32 = arith.constant 0 : i32
    %0 = arith.cmpi eq, %arg1, %c0_i32 : i32
    %1 = arith.extui %0 : i1 to i32
    %c0_i32_0 = arith.constant 0 : i32
    %2 = arith.cmpi ne, %1, %c0_i32_0 : i32
    scf.if %2 {
      %cst_18 = arith.constant 0.000000e+00 : f32
      %21 = vector.broadcast %cst_18 : f32 to vector<1x32x128xf32>
      %c0_19 = arith.constant 0 : index
      %c0_20 = arith.constant 0 : index
      %c0_21 = arith.constant 0 : index
      %22 = vector.load %arg4[%c0_19, %c0_20, %c0_21] : memref<1x32x128xf32, #tpu.memory_space<vmem>>, vector<1x32x128xf32>
      tpu.vector_store %arg4[%c0_19, %c0_20, %c0_21], %21 {strides = array<i32>} : memref<1x32x128xf32, #tpu.memory_space<vmem>>, vector<1x32x128xf32>,
      %cst_22 = arith.constant 0.000000e+00 : f32
      %23 = vector.broadcast %cst_22 : f32 to vector<1x32x128xf32>
      %c0_23 = arith.constant 0 : index
      %c0_24 = arith.constant 0 : index
      %c0_25 = arith.constant 0 : index
      %24 = vector.load %arg5[%c0_23, %c0_24, %c0_25] : memref<1x32x128xf32, #tpu.memory_space<vmem>>, vector<1x32x128xf32>
      tpu.vector_store %arg5[%c0_23, %c0_24, %c0_25], %23 {strides = array<i32>} : memref<1x32x128xf32, #tpu.memory_space<vmem>>, vector<1x32x128xf32>,
    } else {
    }
    %cst = arith.constant 0.000000e+00 : f32
    %3 = vector.broadcast %cst : f32 to vector<1x32x128xf32>
    %cst_1 = arith.constant 0.000000e+00 : f32
    %4 = vector.broadcast %cst_1 : f32 to vector<1x32x128xf32>
    %c0_i32_2 = arith.constant 0 : i32
    %c128_i32 = arith.constant 128 : i32
    %5 = arith.muli %c0_i32_2, %c128_i32 : i32
    %6 = tpu.assume_multiple %5, 128 : i32
    %c0 = arith.constant 0 : index
    %c0_3 = arith.constant 0 : index
    %7 = arith.index_cast %6 : i32 to index
    %8 = vector.load %arg2[%c0, %c0_3, %7] : memref<1x32x128xf32, #tpu.memory_space<vmem>>, vector<1x32x128xf32>
    %9 = arith.addf %3, %8 : vector<1x32x128xf32>
    %10 = arith.mulf %8, %8 : vector<1x32x128xf32>
    %11 = arith.addf %4, %10 : vector<1x32x128xf32>
    %c1_i32 = arith.constant 1 : i32
    %c0_4 = arith.constant 0 : index
    %c0_5 = arith.constant 0 : index
    %c0_6 = arith.constant 0 : index
    %12 = vector.load %arg4[%c0_4, %c0_5, %c0_6] : memref<1x32x128xf32, #tpu.memory_space<vmem>>, vector<1x32x128xf32>
    %13 = arith.addf %12, %9 : vector<1x32x128xf32>
    %c0_7 = arith.constant 0 : index
    %c0_8 = arith.constant 0 : index
    %c0_9 = arith.constant 0 : index
    %14 = vector.load %arg4[%c0_7, %c0_8, %c0_9] : memref<1x32x128xf32, #tpu.memory_space<vmem>>, vector<1x32x128xf32>
    tpu.vector_store %arg4[%c0_7, %c0_8, %c0_9], %13 {strides = array<i32>} : memref<1x32x128xf32, #tpu.memory_space<vmem>>, vector<1x32x128xf32>,
    %c0_10 = arith.constant 0 : index
    %c0_11 = arith.constant 0 : index
    %c0_12 = arith.constant 0 : index
    %15 = vector.load %arg5[%c0_10, %c0_11, %c0_12] : memref<1x32x128xf32, #tpu.memory_space<vmem>>, vector<1x32x128xf32>
    %16 = arith.addf %15, %11 : vector<1x32x128xf32>
    %c0_13 = arith.constant 0 : index
    %c0_14 = arith.constant 0 : index
    %c0_15 = arith.constant 0 : index
    %17 = vector.load %arg5[%c0_13, %c0_14, %c0_15] : memref<1x32x128xf32, #tpu.memory_space<vmem>>, vector<1x32x128xf32>
    tpu.vector_store %arg5[%c0_13, %c0_14, %c0_15], %16 {strides = array<i32>} : memref<1x32x128xf32, #tpu.memory_space<vmem>>, vector<1x32x128xf32>,
    %c1_i32_16 = arith.constant 1 : i32
    %18 = arith.cmpi eq, %arg1, %c1_i32_16 : i32
    %19 = arith.extui %18 : i1 to i32
    %c0_i32_17 = arith.constant 0 : i32
    %20 = arith.cmpi ne, %19, %c0_i32_17 : i32
    scf.if %20 {
      %c0_18 = arith.constant 0 : index
      %c0_19 = arith.constant 0 : index
      %c0_20 = arith.constant 0 : index
      %21 = vector.load %arg4[%c0_18, %c0_19, %c0_20] : memref<1x32x128xf32, #tpu.memory_space<vmem>>, vector<1x32x128xf32>
      %cst_21 = arith.constant dense<0.000000e+00> : vector<1x32xf32>
      %22 = vector.multi_reduction <add>, %21, %cst_21 [2] : vector<1x32x128xf32> to vector<1x32xf32>
      %c0_22 = arith.constant 0 : index
      %c0_23 = arith.constant 0 : index
      %c0_24 = arith.constant 0 : index
      %23 = vector.load %arg5[%c0_22, %c0_23, %c0_24] : memref<1x32x128xf32, #tpu.memory_space<vmem>>, vector<1x32x128xf32>
      %cst_25 = arith.constant dense<0.000000e+00> : vector<1x32xf32>
      %24 = vector.multi_reduction <add>, %23, %cst_25 [2] : vector<1x32x128xf32> to vector<1x32xf32>
      %cst_26 = arith.constant 3.906250e-03 : f32
      %25 = vector.broadcast %cst_26 : f32 to vector<1x32xf32>
      %26 = arith.mulf %22, %25 : vector<1x32xf32>
      %27 = arith.mulf %22, %26 : vector<1x32xf32>
      %28 = arith.subf %24, %27 : vector<1x32xf32>
      %cst_27 = arith.constant 0.00392156886 : f32
      %29 = vector.broadcast %cst_27 : f32 to vector<1x32xf32>
      %30 = arith.mulf %28, %29 : vector<1x32xf32>
      %cst_28 = arith.constant 0.000000e+00 : f32
      %31 = vector.broadcast %cst_28 : f32 to vector<1x32xf32>
      %32 = arith.maximumf %30, %31 : vector<1x32xf32>
      %33 = math.sqrt %32 : vector<1x32xf32>
      %34 = tpu.concatenate %26, %33 in 1 : vector<1x32xf32>, vector<1x32xf32> -> vector<1x64xf32>
      %35 = vector.shape_cast %34 : vector<1x64xf32> to vector<1x1x64xf32>
      %c0_29 = arith.constant 0 : index
      %c0_30 = arith.constant 0 : index
      %c0_31 = arith.constant 0 : index
      %36 = vector.load %arg3[%c0_29, %c0_30, %c0_31] : memref<1x1x64xf32, #tpu.memory_space<vmem>>, vector<1x1x64xf32>
      tpu.vector_store %arg3[%c0_29, %c0_30, %c0_31], %35 {strides = array<i32>} : memref<1x1x64xf32, #tpu.memory_space<vmem>>, vector<1x1x64xf32>,
    } else {
    }
    return
  }
  func.func @transform_0(%arg0: i32, %arg1: i32) -> (i32, i32, i32) {
    %c0_i32 = arith.constant 0 : i32
    %c0_i32_0 = arith.constant 0 : i32
    return %arg0, %c0_i32, %arg1 : i32, i32, i32
  }
  func.func @transform_1(%arg0: i32, %arg1: i32) -> (i32, i32, i32) {
    %c0_i32 = arith.constant 0 : i32
    %c0_i32_0 = arith.constant 0 : i32
    %c0_i32_1 = arith.constant 0 : i32
    return %arg0, %c0_i32, %c0_i32_0 : i32, i32, i32
  }
}

</mosaic_0001>

<bundles_post_ra>
// kernel: tpu_custom_call.1
= control target key start
LH: loop header
LB: loop body
LE: loop exit
PB: predicated region body
PF: predicated region fallthrough
CT: control target
= control target key end

     0   :  { %6 = vsyncpa [#allocation5], 0  ;;  %s966_s0 = inlined_call_operand.hbm [shape: f32[2,32,256], index: 0, kind: input, shape index: {}]   ;;  %s967_s1 = inlined_call_operand.hbm [shape: f32[2,1,64], index: 1, kind: output, shape index: {}]  }
   0x1   :  { %8 = vsyncpa [#allocation5 + $0x1], 0 }
   0x2   :  { %9 = vsyncpa [#allocation6], 0 }
   0x3   :  { %11 = vsyncpa [#allocation6 + $0x1], 0  ;;  %s734_s6 = smov 0   ;;  %s736_s7 = smov 0  }
   0x4   :  { %s738_s8 = smov 0   ;;  %s740_s9 = smov 0  }
   0x5   :  { %s742_s10 = smov 0   ;;  %s744_s11 = smov 0  }
   0x6   :  { %s746_s12 = smov 0   ;;  %s748_s13 = smov 0  }
   0x7   :  { %s750_s14 = smov 0   ;;  %s752_s15 = smov 0  }
   0x8   :  { %s754_s16 = smov 0  }
   0x9 LB: > { %s436_s17 = sadd.s32 4294967295, %s716_s16   ;;  %s437_s18 = sadd.s32 4294967294, %s716_s16   ;;  %s716_s16 = sphi %s754_s16, %s17_s16   ;;  %s712_s15 = sphi %s752_s15, %s985_s15   ;;  %s708_s14 = sphi %s750_s14, %s984_s14   ;;  %s704_s13 = sphi %s748_s13, %s983_s13   ;;  %s700_s12 = sphi %s746_s12, %s982_s12   ;;  %s696_s11 = sphi %s744_s11, %s981_s11   ;;  %s692_s10 = sphi %s742_s10, %s980_s10   ;;  %s688_s9 = sphi %s740_s9, %s979_s9   ;;  %s684_s8 = sphi %s738_s8, %s978_s8   ;;  %s680_s7 = sphi %s736_s7, %s977_s7   ;;  %s676_s6 = sphi %s734_s6, %s976_s6  }
   0xa   : > { %s26_s19 = sadd.s32 1, %s708_s14  ;;  %s29_s20 = sadd.s32 1, %s712_s15 }
   0xb   : > { %p27_p0 = scmp.ge.s32.totalorder %s26_s19, 2  ;;  %s38_s21 = sadd.s32 1, %s696_s11 }
   0xc   : > { %p45_p1 = scmp.ne.s32.totalorder %s696_s11, %s692_s10  ;;  %p46_p2 = scmp.eq.s32.totalorder %s716_s16, 0 }
   0xd   : > { %s987_s19 = smov (%p27_p0, %s26_s19), 0  ;;  %s989_s20 = smov (!%p27_p0, %s29_s20), %s712_s15 }
   0xe   : > { %s34_s22 = ssub.s32 %s708_s14, %s987_s19  ;;  %p800_p3 = por %p46_p2, %p45_p1 }
   0xf   : > { %p31_p4 = scmp.ge.s32.totalorder %s989_s20, 2  ;;  %p51_p5 = scmp.ne.s32.totalorder %s692_s10, %s688_s9 }
  0x10   : > { %p52_p6 = scmp.eq.s32.totalorder %s436_s17, 0  ;;  %s64_s24 = sadd.s32 1, %s684_s8 }
  0x11   : > { %s991_s20 = smov (%p31_p4, %s989_s20), 0  ;;  %p74_p8 = scmp.ne.s32.totalorder %s684_s8, %s680_s7 }
  0x12   : > { %p808_p7 = por %p52_p6, %p51_p5  ;;  %s33_s26 = ssub.s32 %s712_s15, %s991_s20 }
  0x13   : > { %p75_p9 = scmp.eq.s32.totalorder %s436_s17, 3  ;;  %s35_s27 = sor.u32 %s34_s22, %s33_s26 }
  0x14   : > { %p62_p10 = scmp.eq.s32.totalorder %s33_s26, 0  ;;  %p36_p11 = scmp.eq.s32.totalorder %s35_s27, 0 }
  0x15   : > { %p816_p12 = por %p75_p9, %p74_p8  ;;  %p80_p13 = scmp.ne.s32.totalorder %s680_s7, %s676_s6 }
  0x16   : > { %s821_s29 = scalar_select %p62_p10, %s684_s8, %s64_s24  }
  0x17   : > { %s971_s28 = scalar_select %p816_p12, 1, 0 }
  0x18   : > { %s824_s30 = scalar_select %p36_p11, %s696_s11, %s38_s21  }
  0x19   : > { %p81_p0 = scmp.eq.s32.totalorder %s437_s18, 3  ;;  %p462_p1 = scmp.lt.s32.totalorder %s716_s16, 4 }
  0x1a   : > { %s101_s3 = sand.u32 1, %s696_s11   ;;  %s441_s5 = sshll.u32 %s712_s15, 3 }
  0x1b   : > { %p829_p2 = por %p81_p0, %p80_p13  ;;  %s440_s4 = sshll.u32 %s101_s3, 5 }
  0x1c   : > { %s110_s9 = sadd.s32 %s708_s14, %s441_s5  ;;  %s105_s17 = scalar_lea.vmem [#allocation4], %s440_s4 }
  0x1d   : > { %s972_s2 = scalar_select %p829_p2, 1, 0 }
  0x1e   : > { %s113_s22 = sshll.u32 %s105_s17, 4  ;;  %s442_s26 = sshll.u32 %s110_s9, 7  ;;  %s836_s22 = int_to_ptr.vmem [resolvable:$true] %s113_s22 }
  0x1f   : > { %s841_s21 = scalar_lea.hbm %s966_s0, %s442_s26  ;;  %p845_p4 = pnand %p462_p1, %p800_p3 }
  0x20   : > { %s849_s4 = scalar_lea.sflag [#allocation5], %s101_s3  ;;  %s564_s5 = scalar_lea.hbm %s841_s21, 512 }
  0x21   : > { %p565_p5 = scmp.ne.s32.totalorder %s841_s21, %s564_s5  ;;  %p566_p6 = pneg %p845_p4 }
  0x22   : > { %s569_s17 = scalar_lea.hbm %s966_s0, 2048  ;;  %p570_p3 = scmp.lt.u32.totalorder %s841_s21, %s966_s0 }
  0x23   : > { %p567_p8 = pnand %p566_p6, %p565_p5  ;;  %p571_p10 = scmp.lt.u32.totalorder %s569_s17, %s564_s5 }
  0x24   : > { %p573_p13 = scmp.lt.u32.totalorder %s564_s5, %s841_s21 }
  0x25   : > { %p568_p9 = pneg %p567_p8  ;;  %p572_p11 = por %p571_p10, %p570_p3 }
  0x27   : > { %p574_p0 = por %p573_p13, %p572_p11 }
  0x29   : > { %p575_p1 = pnand %p574_p0, %p568_p9 }
  0x2b   : > { %578 = shalt.err (!%p575_p1)
}
  0x2c   : > { %s579_s3 = scalar_lea.vmem %s836_s22, 512  ;;  %s718_s27 = smov [#allocation4]  }
  0x2d   : > { %p580_p5 = scmp.ne.s32.totalorder %s836_s22, %s579_s3  ;;  %s584_s23 = sshll.u32 %s718_s27, 4  ;;  %s585_s23 = int_to_ptr.vmem [resolvable:$false] %s584_s23 }
  0x2e   : > { %s586_s9 = scalar_lea.vmem %s585_s23, 1024  ;;  %p587_p12 = scmp.lt.s32.totalorder %s836_s22, %s585_s23 }
  0x2f   : > { %p582_p8 = pnand %p580_p5, %p566_p6  ;;  %p588_p3 = scmp.lt.s32.totalorder %s586_s9, %s579_s3 }
  0x31   : > { %p583_p2 = pneg %p582_p8  ;;  %p589_p10 = por %p588_p3, %p587_p12 }
  0x33   : > { %p590_p11 = pnand %p589_p10, %p583_p2 }
  0x35   : > { %593 = shalt.err (!%p590_p11)
}
  0x36   : > { %s719_s5 = smov 256   ;;  %s720_s17 = smov 128  }
  0x37   : > { %s721_s26 = smov 8   ;;  %p443_p6 = scmp.ge.s32.totalorder %s716_s16, 1 }
  0x38   : > { %457 = dma.hbm_to_vmem [thread:$0]  (!%p845_p4), %s841_s21, 512, %s836_s22, %s849_s4, %s719_s5, %s720_s17, %s721_s26  }
  0x39   : > { %p121_p9 = scmp.lt.s32.totalorder %s716_s16, 5 }
  0x3b   : > { %p122_p13 = pnand %p443_p6, %p121_p9 }
  0x3c   : > { %s127_s24 = sand.u32 (!%p122_p13), 1, %s692_s10  }
  0x3d   : > { %125 = sbr.rel (%p122_p13) target bundleno = 298 (0x12a), region = 24  ;;  %s444_s3 = sshll.u32 (!%p122_p13), %s127_s24, 5 }
  0x3e   : > { %s128_s27 = scalar_lea.sflag (!%p122_p13), [#allocation5], %s127_s24  ;;  %s131_s23 = scalar_lea.vmem (!%p122_p13), [#allocation4], %s444_s3 }
  0x44   : > { %667 = dma.done.wait (%p808_p7), %s128_s27, 512  }
  0x45   : > { %669 = vsyncadd (%p808_p7), %s128_s27, 4294966784  ;;  %s147_s9 = sand.u32 1, %s680_s7   ;;  %p445_p12 = scmp.ne.s32.totalorder %s700_s12, 0 }
  0x46   : > { %s887_s22 = scalar_lea.vmem [#allocation7], %s147_s9  ;;  %v722_v0 = vmov (!%p445_p12), 0.0  }
  0x47   : > { %152 = sbr.rel (%p445_p12) target bundleno = 78 (0x4e), region = 32  ;;  %153 = vst [vmem:[#allocation2] sm:$0xff] (!%p445_p12), %v722_v0  ;;  %154 = vst [vmem:[#allocation2 + $0x8] sm:$0xff] (!%p445_p12), %v722_v0 }
  0x48   : > { %155 = vst [vmem:[#allocation2 + $0x10] sm:$0xff] (!%p445_p12), %v722_v0  ;;  %156 = vst [vmem:[#allocation2 + $0x18] sm:$0xff] (!%p445_p12), %v722_v0 }
  0x49   : > { %157 = vst [vmem:[#allocation3] sm:$0xff] (!%p445_p12), %v722_v0  ;;  %158 = vst [vmem:[#allocation3 + $0x8] sm:$0xff] (!%p445_p12), %v722_v0 }
  0x4a   : > { %159 = vst [vmem:[#allocation3 + $0x10] sm:$0xff] (!%p445_p12), %v722_v0  ;;  %160 = vst [vmem:[#allocation3 + $0x18] sm:$0xff] (!%p445_p12), %v722_v0 }
  0x4e PF: > { %v161_v1 = vld [vmem:[%s131_s23] sm:$0xff]  ;;  %v162_v3 = vld [vmem:[%s131_s23 + $0x8] sm:$0xff]  ;;  %v163_v6 = vld [vmem:[%s131_s23 + $0x10] sm:$0xff]  ;;  %p446_p7 = scmp.ne.s32.totalorder %s700_s12, 1 }
  0x4f   : > { %v177_v2 = vld [vmem:[#allocation2] sm:$0xff]  ;;  %v178_v5 = vld [vmem:[#allocation2 + $0x8] sm:$0xff]  ;;  %v179_v7 = vld [vmem:[#allocation2 + $0x10] sm:$0xff]  ;;  %v169_v8 = vmul.f32 %v161_v1, %v161_v1  ;;  %v170_v9 = vmul.f32 %v162_v3, %v162_v3  ;;  %v171_v15 = vmul.f32 %v163_v6, %v163_v6  ;;  %v281_v51 = vlaneseq (!%p446_p7) }
  0x50   : > { %v181_v4 = vadd.f32 %v177_v2, %v161_v1  ;;  %v182_v10 = vadd.f32 %v178_v5, %v162_v3  ;;  %v183_v11 = vadd.f32 %v179_v7, %v163_v6  ;;  %v164_v12 = vld [vmem:[%s131_s23 + $0x18] sm:$0xff]  ;;  %v189_v14 = vld [vmem:[#allocation3] sm:$0xff]  ;;  %v190_v18 = vld [vmem:[#allocation3 + $0x8] sm:$0xff]  ;;  %204 = sbr.rel (%p446_p7) target bundleno = 273 (0x111), region = 36  ;;  %vm292_vm0 = vcmask (!%p446_p7), 130112  }
  0x51   : > { %v180_v13 = vld [vmem:[#allocation2 + $0x18] sm:$0xff]  ;;  %v193_v17 = vadd.f32 %v189_v14, %v169_v8  ;;  %v191_v19 = vld [vmem:[#allocation3 + $0x10] sm:$0xff]  ;;  %v172_v20 = vmul.f32 %v164_v12, %v164_v12  ;;  %v194_v22 = vadd.f32 %v190_v18, %v170_v9  ;;  %v282_v58 = vand.u32 (!%p446_p7), 127, %v281_v51 }
  0x52   : > { %185 = vst [vmem:[#allocation2] sm:$0xff] %v181_v4  ;;  %v184_v16 = vadd.f32 %v180_v13, %v164_v12  ;;  %v192_v21 = vld [vmem:[#allocation3 + $0x18] sm:$0xff]  ;;  %186 = vst [vmem:[#allocation2 + $0x8] sm:$0xff] %v182_v10  ;;  %v195_v23 = vadd.f32 %v191_v19, %v171_v15  ;;  %v284_v0 = vshrl.u32 (!%p446_p7), %v281_v51, 7  ;;  %vm299_vm1 = vcmask (!%p446_p7), 195712  }
  0x53   : > { %187 = vst [vmem:[#allocation2 + $0x10] sm:$0xff] %v183_v11  ;;  %197 = vst [vmem:[#allocation3] sm:$0xff] %v193_v17  ;;  %v196_v24 = vadd.f32 %v192_v21, %v172_v20  ;;  %v287_v63 = vadd.s32 (!%p446_p7), 4294967288, %v282_v58  ;;  %v294_v1 = vadd.s32 (!%p446_p7), 4294967280, %v282_v58  ;;  %v301_v2 = vadd.s32 (!%p446_p7), 4294967272, %v282_v58 }
  0x54   : > { %188 = vst [vmem:[#allocation2 + $0x18] sm:$0xff] %v184_v16  ;;  %198 = vst [vmem:[#allocation3 + $0x8] sm:$0xff] %v194_v22  ;;  %v285_v6 = vsub.s32 (!%p446_p7), %v282_v58, %v284_v0  ;;  %v318_v7 = vadd.s32 (!%p446_p7), 4294967256, %v282_v58  ;;  %v313_v11 = vadd.s32 (!%p446_p7), 4294967264, %v282_v58  ;;  %v332_v13 = vadd.s32 (!%p446_p7), 4294967240, %v282_v58 }
  0x55   : > { %199 = vst [vmem:[#allocation3 + $0x10] sm:$0xff] %v195_v23  ;;  %200 = vst [vmem:[#allocation3 + $0x18] sm:$0xff] %v196_v24  ;;  %v290_v3 = vsub.s32 (!%p446_p7), %v287_v63, %v284_v0  ;;  %v297_v5 = vsub.s32 (!%p446_p7), %v294_v1, %v284_v0  ;;  %v304_v9 = vsub.s32 (!%p446_p7), %v301_v2, %v284_v0  ;;  %v325_v16 = vadd.s32 (!%p446_p7), 4294967248, %v282_v58 }
  0x56   : > { %v321_v17 = vsub.s32 (!%p446_p7), %v318_v7, %v284_v0  ;;  %v316_v22 = vsub.s32 (!%p446_p7), %v313_v11, %v284_v0  ;;  %vm323_vm6 = vcmask (!%p446_p7), 392512   ;;  %vm330_vm11 = vcmask (!%p446_p7), 458112  }
  0x57   : > { %vm306_vm12 = vcmask 261312   ;;  %vm337_vm13 = vcmask 523712   ;;  %vm340_vm14 = vcmask 261120   ;;  %vm342_vm15 = vcmask 516096  }
  0x59   : > { %v205_v26 = vld [vmem:[#allocation2] sm:$0xff]  ;;  %v206_v28 = vld [vmem:[#allocation2 + $0x8] sm:$0xff] }
  0x5a   : > { %v207_v25 = vld [vmem:[#allocation2 + $0x10] sm:$0xff]  ;;  %209 = vadd.xlane.f32.xlu0 %v205_v26  ;;  %v217_v30 = vld [vmem:[#allocation3] sm:$0xff]  ;;  %v335_v26 = vsub.s32 %v332_v13, %v284_v0 }
  0x5b   : > { %213 = vadd.xlane.f32.xlu1 %v207_v25  ;;  %v208_v27 = vld [vmem:[#allocation2 + $0x18] sm:$0xff]  ;;  %v218_v29 = vld [vmem:[#allocation3 + $0x8] sm:$0xff] }
  0x5c   : > { %v220_v31 = vld [vmem:[#allocation3 + $0x18] sm:$0xff]  ;;  %v219_v32 = vld [vmem:[#allocation3 + $0x10] sm:$0xff] }
  0x5e   : > { %211 = vadd.xlane.f32.xlu0 %v206_v28 }
  0x5f   : > { %215 = vadd.xlane.f32.xlu1 %v208_v27 }
  0x62   : > { %221 = vadd.xlane.f32.xlu0 %v217_v30  ;;  %v328_v30 = vsub.s32 %v325_v16, %v284_v0 }
  0x63   : > { %223 = vadd.xlane.f32.xlu1 %v218_v29 }
  0x66   : > { %225 = vadd.xlane.f32.xlu0 %v219_v32 }
  0x67   : > { %227 = vadd.xlane.f32.xlu1 %v220_v31 }
  0xe7   : > { %v210_v34 = vpop.xlane.xlu0 %209 }
  0xe8   : > { %v214_v33 = vpop.xlane.xlu1 %213  ;;  %v229_v35 = vmul.f32 0.00390625, %v210_v34 }
  0xe9   : > { %v891_v39 = vmul.f32 0.00390625, %v214_v33 }
  0xea   : > { %v233_v40 = vmul.f32 %v229_v35, %v210_v34  ;;  %v286_v21 = vrot.slane %v229_v35, %v285_v6 }
  0xeb   : > { %v212_v37 = vpop.xlane.xlu0 %211  ;;  %v235_v47 = vmul.f32 %v891_v39, %v214_v33 }
  0xec   : > { %v216_v36 = vpop.xlane.xlu1 %215  ;;  %v230_v38 = vmul.f32 0.00390625, %v212_v37 }
  0xed   : > { %v893_v41 = vmul.f32 0.00390625, %v216_v36 }
  0xee   : > { %v234_v42 = vmul.f32 %v230_v38, %v212_v37  ;;  %v291_v14 = vrot.slane %v230_v38, %v290_v3  ;;  %v298_v37 = vrot.slane %v891_v39, %v297_v5 }
  0xef   : > { %v222_v44 = vpop.xlane.xlu0 %221  ;;  %v236_v48 = vmul.f32 %v893_v41, %v216_v36 }
  0xf0   : > { %v224_v43 = vpop.xlane.xlu1 %223  ;;  %v237_v46 = vsub.f32 %v222_v44, %v233_v40  ;;  %v293_v28 = vsel %vm292_vm0, %v291_v14, %v286_v21 }
  0xf1   : > { %v238_v45 = vsub.f32 %v224_v43, %v234_v42  ;;  %v305_v42 = vrot.slane %v893_v41, %v304_v9 }
  0xf2   : > { %v241_v50 = vmul.f32 0.003921569, %v237_v46 }
  0xf3   : > { %v242_v49 = vmul.f32 0.003921569, %v238_v45  ;;  %v226_v53 = vpop.xlane.xlu0 %225  ;;  %v300_v45 = vsel %vm299_vm1, %v298_v37, %v293_v28 }
  0xf4   : > { %v228_v52 = vpop.xlane.xlu1 %227  ;;  %v245_v55 = vmax.f32 %v241_v50, 0.0  ;;  %v239_v57 = vsub.f32 %v226_v53, %v235_v47  ;;  %v307_v39 = vsel %vm306_vm12, %v305_v42, %v300_v45 }
  0xf5   : > { %v246_v54 = vmax.f32 %v242_v49, 0.0  ;;  %v240_v56 = vsub.f32 %v228_v52, %v236_v48 }
  0xf6   : > { %v243_v60 = vmul.f32 0.003921569, %v239_v57  ;;  %vm251_vm3 = vcmp.eq.f32.partialorder %v245_v55, inf  ;;  %v254_v20 = vand.u32 2147483648, %v245_v55  ;;  %vm253_vm5 = vcmp.eq.f32.partialorder %v245_v55, 0.0 }
  0xf7   : > { %556 = vrsqrt.f32 %v246_v54  ;;  %v244_v59 = vmul.f32 0.003921569, %v240_v56  ;;  %vm258_vm2 = vcmp.eq.f32.partialorder %v246_v54, inf  ;;  %v261_v18 = vand.u32 2147483648, %v246_v54 }
  0xf8   : > { %558 = vrsqrt.f32 %v245_v55  ;;  %v247_v62 = vmax.f32 %v243_v60, 0.0  ;;  %vm260_vm4 = vcmp.eq.f32.partialorder %v246_v54, 0.0 }
  0xf9   : > { %v248_v61 = vmax.f32 %v244_v59, 0.0 }
  0xfa   : > { %vm265_vm9 = vcmp.eq.f32.partialorder %v247_v62, inf  ;;  %v268_v36 = vand.u32 2147483648, %v247_v62  ;;  %vm267_vm10 = vcmp.eq.f32.partialorder %v247_v62, 0.0 }
  0xfb   : > { %560 = vrsqrt.f32 %v248_v61  ;;  %vm272_vm7 = vcmp.eq.f32.partialorder %v248_v61, inf  ;;  %vm274_vm8 = vcmp.eq.f32.partialorder %v248_v61, 0.0  ;;  %v275_v31 = vand.u32 2147483648, %v248_v61 }
  0xfc   : > { %562 = vrsqrt.f32 %v247_v62 }
 0x101   : > { %v557_v4 = vpop.eup %556 }
 0x102   : > { %v559_v8 = vpop.eup %558  ;;  %v257_v10 = vmul.f32 %v557_v4, %v246_v54 }
 0x103   : > { %v250_v12 = vmul.f32 %v559_v8, %v245_v55 }
 0x104   : > { %v259_v15 = vsel %vm258_vm2, %v246_v54, %v257_v10 }
 0x105   : > { %v252_v19 = vsel %vm251_vm3, %v245_v55, %v250_v12  ;;  %v561_v23 = vpop.eup %560  ;;  %v262_v24 = vsel %vm260_vm4, %v261_v18, %v259_v15 }
 0x106   : > { %v255_v25 = vsel %vm253_vm5, %v254_v20, %v252_v19  ;;  %v563_v27 = vpop.eup %562  ;;  %v271_v29 = vmul.f32 %v561_v23, %v248_v61  ;;  %v322_v33 = vrot.slane %v262_v24, %v321_v17 }
 0x107   : > { %v264_v32 = vmul.f32 %v563_v27, %v247_v62  ;;  %v317_v34 = vrot.slane %v255_v25, %v316_v22 }
 0x108   : > { %v273_v35 = vsel %vm272_vm7, %v248_v61, %v271_v29 }
 0x109   : > { %v276_v38 = vsel %vm274_vm8, %v275_v31, %v273_v35  ;;  %v266_v40 = vsel %vm265_vm9, %v247_v62, %v264_v32  ;;  %v324_v47 = vsel %vm323_vm6, %v322_v33, %v317_v34 }
 0x10a   : > { %v336_v43 = vrot.slane %v276_v38, %v335_v26  ;;  %v269_v44 = vsel %vm267_vm10, %v268_v36, %v266_v40 }
 0x10b   : > { %v329_v46 = vrot.slane %v269_v44, %v328_v30 }
 0x10d   : > { %v331_v48 = vsel %vm330_vm11, %v329_v46, %v324_v47 }
 0x10e   : > { %v338_v49 = vsel %vm337_vm13, %v336_v43, %v331_v48 }
 0x10f   : > { %v341_v50 = vsel %vm340_vm14, %v307_v39, %v338_v49 }
 0x110   : > { %343 = vst.msk [vmem:[%s887_s22] sm:$0x1] %vm342_vm15, %v341_v50 }
 0x111 PF: > { %s447_s12 = sshll.u32 %s704_s13, 4  ;;  %s357_s4 = sshll.u32 %s887_s22, 4  ;;  %s358_s4 = int_to_ptr.vmem [resolvable:$true] %s357_s4 }
 0x112   : > { %s907_s18 = scalar_lea.hbm %s967_s1, %s447_s12  ;;  %s345_s5 = scalar_lea.sflag [#allocation6], %s147_s9 }
 0x113   : > { %s594_s17 = scalar_lea.vmem %s358_s4, 16  ;;  %p974_p4 = scmp.ne.s32.totalorder %s971_s28, 0 }
 0x114   : > { %p595_p2 = scmp.ne.s32.totalorder %s358_s4, %s594_s17  ;;  %s723_s26 = smov [#allocation7]  }
 0x115   : > { %s598_s24 = sshll.u32 %s723_s26, 4  ;;  %s599_s24 = int_to_ptr.vmem [resolvable:$false] %s598_s24 }
 0x116   : > { %p596_p0 = pnand %p595_p2, %p974_p4  ;;  %s600_s3 = scalar_lea.vmem %s599_s24, 32 }
 0x117   : > { %p601_p5 = scmp.lt.s32.totalorder %s358_s4, %s599_s24  ;;  %p602_p8 = scmp.lt.s32.totalorder %s600_s3, %s594_s17 }
 0x118   : > { %p597_p1 = pneg %p596_p0 }
 0x119   : > { %p603_p3 = por %p602_p8, %p601_p5 }
 0x11b   : > { %p604_p10 = pnand %p603_p3, %p597_p1 }
 0x11d   : > { %607 = shalt.err (!%p604_p10)
}
 0x11e   : > { %s608_s13 = scalar_lea.hbm %s907_s18, 16  ;;  %s612_s9 = scalar_lea.hbm %s967_s1, 32 }
 0x11f   : > { %p609_p11 = scmp.ne.s32.totalorder %s907_s18, %s608_s13  ;;  %p613_p13 = scmp.lt.u32.totalorder %s907_s18, %s967_s1 }
 0x120   : > { %p614_p12 = scmp.lt.u32.totalorder %s612_s9, %s608_s13  ;;  %p616_p2 = scmp.lt.u32.totalorder %s608_s13, %s907_s18 }
 0x121   : > { %p610_p6 = pnand %p609_p11, %p974_p4 }
 0x122   : > { %p615_p7 = por %p614_p12, %p613_p13 }
 0x123   : > { %p611_p9 = pneg %p610_p6 }
 0x124   : > { %p617_p0 = por %p616_p2, %p615_p7 }
 0x126   : > { %p618_p1 = pnand %p617_p0, %p611_p9 }
 0x128   : > { %621 = shalt.err (!%p618_p1)
}
 0x129   : > { %452 = dma.vmem_to_hbm [thread:$0]  (%p974_p4), %s358_s4, 16, %s907_s18, %s345_s5  }
 0x12a PF: > { %p463_p5 = scmp.ge.s32.totalorder %s716_s16, 2  ;;  %s369_s25 = sand.u32 1, %s676_s6  }
 0x12b   : > { %p975_p8 = scmp.ne.s32.totalorder %s972_s2, 0  ;;  %s370_s21 = scalar_lea.sflag [#allocation6], %s369_s25 }
 0x12d   : > { %p459_p3 = pnand %p463_p5, %p975_p8 }
 0x12f   : > { %671 = dma.done.wait (!%p459_p3), %s370_s21, 16  }
 0x130   : > { %673 = vsyncadd (!%p459_p3), %s370_s21, 4294967280  ;;  %s17_s16 = sadd.s32 1, %s716_s16   ;;  %s976_s6 = smov %s680_s7 }
 0x131   : > { %p14_p10 = scmp.ge.s32.totalorder %s17_s16, 6   ;;  %s977_s7 = smov %s684_s8 }
 0x132   : > { %s978_s8 = smov %s821_s29  ;;  %s979_s9 = smov %s692_s10 }
 0x133   : > { %s980_s10 = smov %s696_s11  ;;  %s981_s11 = smov %s824_s30 }
 0x134   : > { %s982_s12 = smov %s708_s14  ;;  %s983_s13 = smov %s712_s15 }
 0x135   : > { %s984_s14 = smov %s987_s19  ;;  %s985_s15 = smov %s991_s20 }
 0x136   :  { %16 = sbr.rel (!%p14_p10) target bundleno = 9 (0x9), region = 77 }
 0x13d   :  { %374 = vsyncpa [#allocation5], 1 }
 0x13e   :  { %376 = vsyncpa [#allocation5 + $0x1], 1 }
 0x13f   :  { %377 = vsyncpa [#allocation6], 1 }
 0x140   :  { %379 = vsyncpa [#allocation6 + $0x1], 1 }

</bundles_post_ra>
